<compile_context>
chip_gen: v7x
topology: tpu7x:2x2x1
jax: 0.10.0
libtpu: 0.0.40
codegen_flags: <defaults>
</compile_context>

<pallas_src>
import math

import jax
import jax.numpy as jnp
from jax.experimental import pallas as pl
from jax.experimental.pallas import tpu as pltpu

_SQRT2 = math.sqrt(2.0)
_LRELU = 0.2


def _fused_leaky(y):
    # bias is added by the caller; slope 0.2, gain sqrt(2)  (f32 math)
    return jnp.where(y >= 0.0, y, _LRELU * y) * _SQRT2


# ----------------------------------------------------------------------------
# Pallas kernels
# ----------------------------------------------------------------------------
def _style_conv_kernel(p_ref, s_ref, d_ref, w_ref, b_ref, o_ref):
    # p_ref: (1, TM, K)    bf16 im2col patch tile (K = 9*Cin, tap-major)
    # s_ref: (1, K, 1)     f32 per-sample modulation (tiled over the 9 taps)
    # d_ref: (1, 1, Cout)  f32 per-sample demodulation
    # w_ref: (K, Cout)     bf16 shared (equalized-lr scaled) weight, VMEM-resident
    # b_ref: (1, 1, Cout)  f32 bias
    # o_ref: (1, TM, Cout) bf16
    w_mod = (w_ref[...].astype(jnp.float32) * s_ref[0] * d_ref[0]).astype(jnp.bfloat16)
    y = jnp.dot(p_ref[0], w_mod, preferred_element_type=jnp.float32)
    y = _fused_leaky(y + b_ref[0])
    # TODO(synk): per-pixel noise injection of StyledConv omitted (zero noise).
    o_ref[0] = y.astype(o_ref.dtype)


def _style_conv_rgb_kernel(p_ref, s_ref, d_ref, w_ref, b_ref,
                           srgb_ref, wrgb_ref, brgb_ref, skip_ref,
                           o_ref, rgb_ref):
    # conv1 (3x3 modulated conv + demod + bias + fused leaky relu) with the
    # ToRGB 1x1 modulated conv (no demod) + bias + skip-add fused in the epilogue.
    # Extra refs: srgb (1, Cout, 1) f32, wrgb (Cout, 3) bf16, brgb (1, 1, 3) f32,
    #             skip (1, TM, 3) f32; outputs o (1, TM, Cout) bf16, rgb (1, TM, 3) f32.
    w_mod = (w_ref[...].astype(jnp.float32) * s_ref[0] * d_ref[0]).astype(jnp.bfloat16)
    y = jnp.dot(p_ref[0], w_mod, preferred_element_type=jnp.float32)
    y = _fused_leaky(y + b_ref[0])
    o_ref[0] = y.astype(o_ref.dtype)

    wrgb_mod = (wrgb_ref[...].astype(jnp.float32) * srgb_ref[0]).astype(jnp.bfloat16)
    rgb = jnp.dot(y.astype(jnp.bfloat16), wrgb_mod, preferred_element_type=jnp.float32)
    rgb_ref[0] = rgb + brgb_ref[0] + skip_ref[0]


# ----------------------------------------------------------------------------
# Pallas wrappers
# ----------------------------------------------------------------------------
_COMPILER_PARAMS = pltpu.CompilerParams(
    dimension_semantics=("parallel", "parallel"),   # batch x HW-tile (megacore)
    vmem_limit_bytes=48 * 1024 * 1024,              # explicit; safe on v5e/v6e/v7x
)


def _pick_tm(hw, k, cout):
    """Largest HW tile whose double-buffered blocks stay well under v7x VMEM."""
    budget = 12 * 1024 * 1024
    tm = min(hw, 512)
    # 2 pipeline buffers x (bf16 patches + bf16 features + f32 skip + f32 rgb)
    while tm > 8 and 2 * tm * (2 * k + 2 * cout + 4 * 3 * 2) > budget:
        tm //= 2
    return tm      # hw is a power of two >= 16, so tm always divides hw


def _style_conv_pallas(patches, s_col, demod, w2, bias):
    B, HW, K = patches.shape
    Cout = w2.shape[-1]
    TM = _pick_tm(HW, K, Cout)
    return pl.pallas_call(
        _style_conv_kernel,
        out_shape=jax.ShapeDtypeStruct((B, HW, Cout), jnp.bfloat16),
        grid=(B, HW // TM),
        in_specs=[
            pl.BlockSpec((1, TM, K), lambda b, t: (b, t, 0)),
            pl.BlockSpec((1, K, 1), lambda b, t: (b, 0, 0)),
            pl.BlockSpec((1, 1, Cout), lambda b, t: (b, 0, 0)),
            pl.BlockSpec((K, Cout), lambda b, t: (0, 0)),       # VMEM-resident
            pl.BlockSpec((1, 1, Cout), lambda b, t: (0, 0, 0)),
        ],
        out_specs=pl.BlockSpec((1, TM, Cout), lambda b, t: (b, t, 0)),
        compiler_params=_COMPILER_PARAMS,
    )(
        patches.astype(jnp.bfloat16),
        s_col.astype(jnp.float32),
        demod.reshape(B, 1, Cout).astype(jnp.float32),
        w2.astype(jnp.bfloat16),
        bias.reshape(1, 1, Cout).astype(jnp.float32),
    )


def _style_conv_rgb_pallas(patches, s_col, demod, w2, bias,
                           s_rgb, w_rgb, b_rgb, skip2):
    B, HW, K = patches.shape
    Cout = w2.shape[-1]
    TM = _pick_tm(HW, K, Cout)
    return pl.pallas_call(
        _style_conv_rgb_kernel,
        out_shape=(jax.ShapeDtypeStruct((B, HW, Cout), jnp.bfloat16),
                   jax.ShapeDtypeStruct((B, HW, 3), jnp.float32)),
        grid=(B, HW // TM),
        in_specs=[
            pl.BlockSpec((1, TM, K), lambda b, t: (b, t, 0)),
            pl.BlockSpec((1, K, 1), lambda b, t: (b, 0, 0)),
            pl.BlockSpec((1, 1, Cout), lambda b, t: (b, 0, 0)),
            pl.BlockSpec((K, Cout), lambda b, t: (0, 0)),       # VMEM-resident
            pl.BlockSpec((1, 1, Cout), lambda b, t: (0, 0, 0)),
            pl.BlockSpec((1, Cout, 1), lambda b, t: (b, 0, 0)),
            pl.BlockSpec((Cout, 3), lambda b, t: (0, 0)),       # VMEM-resident
            pl.BlockSpec((1, 1, 3), lambda b, t: (0, 0, 0)),
            pl.BlockSpec((1, TM, 3), lambda b, t: (b, t, 0)),
        ],
        out_specs=(pl.BlockSpec((1, TM, Cout), lambda b, t: (b, t, 0)),
                   pl.BlockSpec((1, TM, 3), lambda b, t: (b, t, 0))),
        compiler_params=_COMPILER_PARAMS,
    )(
        patches.astype(jnp.bfloat16),
        s_col.astype(jnp.float32),
        demod.reshape(B, 1, Cout).astype(jnp.float32),
        w2.astype(jnp.bfloat16),
        bias.reshape(1, 1, Cout).astype(jnp.float32),
        s_rgb.reshape(B, Cout, 1).astype(jnp.float32),
        w_rgb.astype(jnp.bfloat16),
        b_rgb.reshape(1, 1, 3).astype(jnp.float32),
        skip2.astype(jnp.float32),
    )


# ----------------------------------------------------------------------------
# JAX glue (layout plumbing, parameter setup)
# ----------------------------------------------------------------------------
def _affine(w_style, p):
    # equalized-lr linear mapping style -> per-channel modulation (bias init 1)
    return w_style @ (p["mod_w"] * p["mod_scale"]) + p["mod_b"][None, :]


def _im2col_3x3(x):
    # x: (B, H, W, C) bf16 -> (B, H*W, 9*C), tap-major / channel-minor ordering.
    # TODO(synk): move the 9-tap gather into the kernel (halo row tiling) to
    # remove the 9x im2col HBM inflation entirely; bf16 already halves the bytes.
    B, H, W, C = x.shape
    xp = jnp.pad(x, ((0, 0), (1, 1), (1, 1), (0, 0)))
    cols = [xp[:, dh:dh + H, dw:dw + W, :] for dh in range(3) for dw in range(3)]
    return jnp.concatenate(cols, axis=-1).reshape(B, H * W, 9 * C)


def _upsample2x(x):
    # TODO(synk): StyleGAN2 transposed-conv + blur upsample approximated with
    # nearest-neighbour; fusing the repeat into the conv index math would save
    # one 4x HBM round-trip per block.
    return jnp.repeat(jnp.repeat(x, 2, axis=1), 2, axis=2)


def _conv_mod_inputs(x, w_style, p):
    # Shared prep for the modulated 3x3 conv: style affine, demod, im2col (bf16).
    B, H, W, Cin = x.shape
    Cout = p["weight"].shape[-1]
    s = _affine(w_style, p)                                    # (B, Cin)  f32
    w = p["weight"] * p["w_scale"]                             # (9, Cin, Cout) f32
    demod = jax.lax.rsqrt(jnp.einsum("kio,bi->bo", w * w, s * s) + 1e-8)
    patches = _im2col_3x3(x.astype(jnp.bfloat16))              # (B, HW, 9*Cin)
    s_col = jnp.tile(s, (1, 9)).reshape(B, 9 * Cin, 1)         # tap-major tiling
    return patches, s_col, demod, w.reshape(9 * Cin, Cout)


def style_block_apply(x, w_style, p, upsample):
    if upsample:
        x = _upsample2x(x)
    B, H, W, _ = x.shape
    Cout = p["weight"].shape[-1]
    patches, s_col, demod, w2 = _conv_mod_inputs(x, w_style, p)
    y = _style_conv_pallas(patches, s_col, demod, w2, p["bias"])
    return y.reshape(B, H, W, Cout)


def style_block_rgb_apply(x, w_style, p, w_style_rgb, p_rgb, skip):
    # conv1 with ToRGB + skip-add fused into the same kernel (no re-read of out).
    B, H, W, _ = x.shape
    Cout = p["weight"].shape[-1]
    patches, s_col, demod, w2 = _conv_mod_inputs(x, w_style, p)
    s_rgb = _affine(w_style_rgb, p_rgb)                        # (B, Cout)
    w_rgb = p_rgb["weight"] * p_rgb["w_scale"]                 # (Cout, 3)
    if skip is None:
        skip = jnp.zeros((B, H, W, 3), jnp.float32)
    out, rgb = _style_conv_rgb_pallas(
        patches, s_col, demod, w2, p["bias"],
        s_rgb, w_rgb, p_rgb["bias"], skip.reshape(B, H * W, 3))
    return out.reshape(B, H, W, Cout), rgb.reshape(B, H, W, 3)


def eigenspace_apply(style, factor, p):
    # TODO(synk): EigenSpace_onlyL source not provided; modeled as
    # style + factor * (style @ L) with a learnable square matrix L.
    return style + factor * (style @ p["L"])


# ----------------------------------------------------------------------------
# Parameter init (deterministic, synthetic weights)
# ----------------------------------------------------------------------------
def _init_style_conv(key, in_ch, out_ch, style_dim):
    k1, k2 = jax.random.split(key, 2)
    return dict(
        weight=jax.random.normal(k1, (9, in_ch, out_ch), jnp.float32),
        w_scale=1.0 / math.sqrt(in_ch * 9),
        mod_w=jax.random.normal(k2, (style_dim, in_ch), jnp.float32),
        mod_scale=1.0 / math.sqrt(style_dim),
        mod_b=jnp.ones((in_ch,), jnp.float32),
        bias=jnp.zeros((out_ch,), jnp.float32),
    )


def _init_torgb(key, in_ch, style_dim):
    k1, k2 = jax.random.split(key, 2)
    return dict(
        weight=jax.random.normal(k1, (in_ch, 3), jnp.float32),
        w_scale=1.0 / math.sqrt(in_ch),
        mod_w=jax.random.normal(k2, (style_dim, in_ch), jnp.float32),
        mod_scale=1.0 / math.sqrt(style_dim),
        mod_b=jnp.ones((in_ch,), jnp.float32),
        bias=jnp.zeros((3,), jnp.float32),
    )


def _init_eigenspace(key, style_dim):
    return dict(L=0.1 * jax.random.normal(key, (style_dim, style_dim), jnp.float32))


def init_synthesis_params(key, resolution, style_dim,
                          channel_base=32768, channel_max=128):
    reslog2 = int(math.log(resolution, 2))
    res_list = [2 ** i for i in range(2, reslog2 + 1)]
    channels = {r: min(channel_base // r, channel_max) for r in res_list}

    key, kc = jax.random.split(key)
    params = dict(const=jax.random.normal(kc, (1, 4, 4, channels[4]), jnp.float32),
                  blocks=[])
    style_num = 1
    for res in res_list:
        in_ch = channels[res // 2] if res > 4 else 0
        out_ch = channels[res]
        blk = {"in_channel": in_ch, "conv_num": 0, "subspaces": []}
        if in_ch != 0:
            key, k = jax.random.split(key)
            blk["conv0"] = _init_style_conv(k, in_ch, out_ch, style_dim)
            blk["conv_num"] += 1
            key, k = jax.random.split(key)
            blk["subspaces"].append(_init_eigenspace(k, style_dim))
        key, k = jax.random.split(key)
        blk["conv1"] = _init_style_conv(k, out_ch, out_ch, style_dim)
        blk["conv_num"] += 1
        key, k = jax.random.split(key)
        blk["subspaces"].append(_init_eigenspace(k, style_dim))
        key, k = jax.random.split(key)
        blk["torgb"] = _init_torgb(k, out_ch, style_dim)
        key, k = jax.random.split(key)
        blk["subspaces"].append(_init_eigenspace(k, style_dim))
        params["blocks"].append(blk)
        style_num += blk["conv_num"]
    return params, style_num


# ----------------------------------------------------------------------------
# Full forward pass (mirrors SynthesisNetwork_Mode3.forward)
# ----------------------------------------------------------------------------
def synthesis_forward(params, styles, sub_factor):
    B = styles.shape[0]
    const = params["const"]
    x = jnp.broadcast_to(const, (B,) + const.shape[1:])        # (B, 4, 4, C4)

    out = None
    skip = None
    style_idx = 0
    for bp in params["blocks"]:
        cn = bp["conv_num"]
        cur_styles = [styles[:, style_idx + j] for j in range(cn + 1)]
        cur_factors = list(sub_factor[style_idx: style_idx + cn + 1])
        style_idx += cn

        mod_styles = [eigenspace_apply(cur_styles[j], cur_factors[j],
                                       bp["subspaces"][j])
                      for j in range(cn + 1)]

        if bp["in_channel"] == 0:
            out, skip = style_block_rgb_apply(
                x, mod_styles[0], bp["conv1"], mod_styles[1], bp["torgb"],
                skip=None)
        else:
            out = style_block_apply(out, mod_styles[0], bp["conv0"], upsample=True)
            out, skip = style_block_rgb_apply(
                out, mod_styles[1], bp["conv1"], mod_styles[2], bp["torgb"],
                skip=_upsample2x(skip))
    image = skip                                               # (B, H, W, 3) f32
    return jnp.transpose(image, (0, 3, 1, 2))                  # NCHW to match torch


# ----------------------------------------------------------------------------
if __name__ == "__main__":
    resolution = 16
    style_dim = 32
    channel_base = 128   # small synthetic config: channels {4:32, 8:16, 16:8}
    channel_max = 32
    batch = 2

    key = jax.random.PRNGKey(0)
    kp, ks = jax.random.split(key)
    params, style_num = init_synthesis_params(
        kp, resolution, style_dim, channel_base, channel_max)

    styles = jax.random.normal(ks, (batch, style_num, style_dim), jnp.float32)
    sub_factor = [0.1 * (i + 1) for i in range(style_num)]

    image = synthesis_forward(params, styles, sub_factor)
    image = jax.block_until_ready(image)
    assert image.shape == (batch, 3, resolution, resolution), image.shape
    assert bool(jnp.all(jnp.isfinite(image)))
    print("KERNEL_OK")
</pallas_src>

<mosaic_0001>
module attributes {stable_mosaic.version = 11 : i64} {
  func.func @_style_conv_rgb_kernel(%arg0: i32, %arg1: i32, %arg2: memref<1x16x288xbf16, #tpu.memory_space<vmem>>, %arg3: memref<1x288x1xf32, #tpu.memory_space<vmem>>, %arg4: memref<1x1x32xf32, #tpu.memory_space<vmem>>, %arg5: memref<288x32xbf16, #tpu.memory_space<vmem>>, %arg6: memref<1x1x32xf32, #tpu.memory_space<vmem>>, %arg7: memref<1x32x1xf32, #tpu.memory_space<vmem>>, %arg8: memref<32x3xbf16, #tpu.memory_space<vmem>>, %arg9: memref<1x1x3xf32, #tpu.memory_space<vmem>>, %arg10: memref<1x16x3xf32, #tpu.memory_space<vmem>>, %arg11: memref<1x16x32xbf16, #tpu.memory_space<vmem>>, %arg12: memref<1x16x3xf32, #tpu.memory_space<vmem>>) attributes {dimension_semantics = [#tpu.dimension_semantics<parallel>, #tpu.dimension_semantics<parallel>], iteration_bounds = array<i64: 2, 1>, scalar_prefetch = 0 : i64, scratch_operands = 0 : i64, tpu.core_type = #tpu.core_type<tc>, window_params = [{transform_indices = @transform_0, window_bounds = array<i64: 1, 16, 288>}, {transform_indices = @transform_1, window_bounds = array<i64: 1, 288, 1>}, {transform_indices = @transform_2, window_bounds = array<i64: 1, 1, 32>}, {pipeline_mode = #tpu.pipeline_mode<synchronous>, transform_indices = @transform_3, window_bounds = array<i64: 288, 32>}, {pipeline_mode = #tpu.pipeline_mode<synchronous>, transform_indices = @transform_4, window_bounds = array<i64: 1, 1, 32>}, {transform_indices = @transform_5, window_bounds = array<i64: 1, 32, 1>}, {pipeline_mode = #tpu.pipeline_mode<synchronous>, transform_indices = @transform_6, window_bounds = array<i64: 32, 3>}, {pipeline_mode = #tpu.pipeline_mode<synchronous>, transform_indices = @transform_7, window_bounds = array<i64: 1, 1, 3>}, {transform_indices = @transform_8, window_bounds = array<i64: 1, 16, 3>}, {transform_indices = @transform_9, window_bounds = array<i64: 1, 16, 32>}, {transform_indices = @transform_10, window_bounds = array<i64: 1, 16, 3>}]} {
    %c0 = arith.constant 0 : index
    %c0_0 = arith.constant 0 : index
    %0 = vector.load %arg5[%c0, %c0_0] : memref<288x32xbf16, #tpu.memory_space<vmem>>, vector<288x32xbf16>
    %1 = arith.extf %0 : vector<288x32xbf16> to vector<288x32xf32>
    %c0_1 = arith.constant 0 : index
    %c0_2 = arith.constant 0 : index
    %c0_3 = arith.constant 0 : index
    %2 = vector.load %arg3[%c0_1, %c0_2, %c0_3] : memref<1x288x1xf32, #tpu.memory_space<vmem>>, vector<1x288x1xf32>
    %3 = vector.shape_cast %2 : vector<1x288x1xf32> to vector<288x1xf32>
    %4 = vector.broadcast %3 : vector<288x1xf32> to vector<288x32xf32>
    %5 = arith.mulf %1, %4 : vector<288x32xf32>
    %c0_4 = arith.constant 0 : index
    %c0_5 = arith.constant 0 : index
    %c0_6 = arith.constant 0 : index
    %6 = vector.load %arg4[%c0_4, %c0_5, %c0_6] : memref<1x1x32xf32, #tpu.memory_space<vmem>>, vector<1x1x32xf32>
    %7 = vector.shape_cast %6 : vector<1x1x32xf32> to vector<1x32xf32>
    %8 = vector.broadcast %7 : vector<1x32xf32> to vector<288x32xf32>
    %9 = arith.mulf %5, %8 : vector<288x32xf32>
    %10 = arith.truncf %9 : vector<288x32xf32> to vector<288x32xbf16>
    %c0_7 = arith.constant 0 : index
    %c0_8 = arith.constant 0 : index
    %c0_9 = arith.constant 0 : index
    %11 = vector.load %arg2[%c0_7, %c0_8, %c0_9] : memref<1x16x288xbf16, #tpu.memory_space<vmem>>, vector<1x16x288xbf16>
    %12 = vector.shape_cast %11 : vector<1x16x288xbf16> to vector<16x288xbf16>
    %cst = arith.constant dense<0.000000e+00> : vector<16x32xf32>
    %13 = tpu.matmul %12, %10, %cst {dimension_numbers = #tpu.dot_dimension_numbers<[1], [0], [0], [1], [0, 0, 1, 1], [], []>} : vector<16x288xbf16>, vector<288x32xbf16>, vector<16x32xf32> -> vector<16x32xf32>
    %c0_10 = arith.constant 0 : index
    %c0_11 = arith.constant 0 : index
    %c0_12 = arith.constant 0 : index
    %14 = vector.load %arg6[%c0_10, %c0_11, %c0_12] : memref<1x1x32xf32, #tpu.memory_space<vmem>>, vector<1x1x32xf32>
    %15 = vector.shape_cast %14 : vector<1x1x32xf32> to vector<1x32xf32>
    %16 = vector.broadcast %15 : vector<1x32xf32> to vector<16x32xf32>
    %17 = arith.addf %13, %16 : vector<16x32xf32>
    %cst_13 = arith.constant 0.000000e+00 : f32
    %18 = vector.broadcast %cst_13 : f32 to vector<16x32xf32>
    %19 = arith.cmpf oge, %17, %18 : vector<16x32xf32>
    %cst_14 = arith.constant 2.000000e-01 : f32
    %20 = vector.broadcast %cst_14 : f32 to vector<16x32xf32>
    %21 = arith.mulf %20, %17 : vector<16x32xf32>
    %22 = arith.select %19, %17, %21 : vector<16x32xi1>, vector<16x32xf32>
    %cst_15 = arith.constant 1.41421354 : f32
    %23 = vector.broadcast %cst_15 : f32 to vector<16x32xf32>
    %24 = arith.mulf %22, %23 : vector<16x32xf32>
    %25 = arith.truncf %24 : vector<16x32xf32> to vector<16x32xbf16>
    %c0_16 = arith.constant 0 : index
    %c0_17 = arith.constant 0 : index
    %c0_18 = arith.constant 0 : index
    %26 = vector.load %arg11[%c0_16, %c0_17, %c0_18] : memref<1x16x32xbf16, #tpu.memory_space<vmem>>, vector<1x16x32xbf16>
    %27 = vector.shape_cast %26 : vector<1x16x32xbf16> to vector<16x32xbf16>
    %28 = vector.shape_cast %25 : vector<16x32xbf16> to vector<1x16x32xbf16>
    tpu.vector_store %arg11[%c0_16, %c0_17, %c0_18], %28 {strides = array<i32>} : memref<1x16x32xbf16, #tpu.memory_space<vmem>>, vector<1x16x32xbf16>,
    %c0_19 = arith.constant 0 : index
    %c0_20 = arith.constant 0 : index
    %29 = vector.load %arg8[%c0_19, %c0_20] : memref<32x3xbf16, #tpu.memory_space<vmem>>, vector<32x3xbf16>
    %30 = arith.extf %29 : vector<32x3xbf16> to vector<32x3xf32>
    %c0_21 = arith.constant 0 : index
    %c0_22 = arith.constant 0 : index
    %c0_23 = arith.constant 0 : index
    %31 = vector.load %arg7[%c0_21, %c0_22, %c0_23] : memref<1x32x1xf32, #tpu.memory_space<vmem>>, vector<1x32x1xf32>
    %32 = vector.shape_cast %31 : vector<1x32x1xf32> to vector<32x1xf32>
    %33 = vector.broadcast %32 : vector<32x1xf32> to vector<32x3xf32>
    %34 = arith.mulf %30, %33 : vector<32x3xf32>
    %35 = arith.truncf %34 : vector<32x3xf32> to vector<32x3xbf16>
    %36 = arith.truncf %24 : vector<16x32xf32> to vector<16x32xbf16>
    %cst_24 = arith.constant dense<0.000000e+00> : vector<16x3xf32>
    %37 = tpu.matmul %36, %35, %cst_24 {dimension_numbers = #tpu.dot_dimension_numbers<[1], [0], [0], [1], [0, 0, 1, 1], [], []>} : vector<16x32xbf16>, vector<32x3xbf16>, vector<16x3xf32> -> vector<16x3xf32>
    %c0_25 = arith.constant 0 : index
    %c0_26 = arith.constant 0 : index
    %c0_27 = arith.constant 0 : index
    %38 = vector.load %arg9[%c0_25, %c0_26, %c0_27] : memref<1x1x3xf32, #tpu.memory_space<vmem>>, vector<1x1x3xf32>
    %39 = vector.shape_cast %38 : vector<1x1x3xf32> to vector<1x3xf32>
    %40 = vector.broadcast %39 : vector<1x3xf32> to vector<16x3xf32>
    %41 = arith.addf %37, %40 : vector<16x3xf32>
    %c0_28 = arith.constant 0 : index
    %c0_29 = arith.constant 0 : index
    %c0_30 = arith.constant 0 : index
    %42 = vector.load %arg10[%c0_28, %c0_29, %c0_30] : memref<1x16x3xf32, #tpu.memory_space<vmem>>, vector<1x16x3xf32>
    %43 = vector.shape_cast %42 : vector<1x16x3xf32> to vector<16x3xf32>
    %44 = arith.addf %41, %43 : vector<16x3xf32>
    %c0_31 = arith.constant 0 : index
    %c0_32 = arith.constant 0 : index
    %c0_33 = arith.constant 0 : index
    %45 = vector.load %arg12[%c0_31, %c0_32, %c0_33] : memref<1x16x3xf32, #tpu.memory_space<vmem>>, vector<1x16x3xf32>
    %46 = vector.shape_cast %45 : vector<1x16x3xf32> to vector<16x3xf32>
    %47 = vector.shape_cast %44 : vector<16x3xf32> to vector<1x16x3xf32>
    tpu.vector_store %arg12[%c0_31, %c0_32, %c0_33], %47 {strides = array<i32>} : memref<1x16x3xf32, #tpu.memory_space<vmem>>, vector<1x16x3xf32>,
    return
  }
  func.func @transform_0(%arg0: i32, %arg1: i32) -> (i32, i32, i32) {
    %c0_i32 = arith.constant 0 : i32
    %c0_i32_0 = arith.constant 0 : i32
    return %arg0, %arg1, %c0_i32 : i32, i32, i32
  }
  func.func @transform_1(%arg0: i32, %arg1: i32) -> (i32, i32, i32) {
    %c0_i32 = arith.constant 0 : i32
    %c0_i32_0 = arith.constant 0 : i32
    %c0_i32_1 = arith.constant 0 : i32
    return %arg0, %c0_i32, %c0_i32_0 : i32, i32, i32
  }
  func.func @transform_2(%arg0: i32, %arg1: i32) -> (i32, i32, i32) {
    %c0_i32 = arith.constant 0 : i32
    %c0_i32_0 = arith.constant 0 : i32
    %c0_i32_1 = arith.constant 0 : i32
    return %arg0, %c0_i32, %c0_i32_0 : i32, i32, i32
  }
  func.func @transform_3(%arg0: i32, %arg1: i32) -> (i32, i32) {
    %c0_i32 = arith.constant 0 : i32
    %c0_i32_0 = arith.constant 0 : i32
    %c0_i32_1 = arith.constant 0 : i32
    return %c0_i32, %c0_i32_0 : i32, i32
  }
  func.func @transform_4(%arg0: i32, %arg1: i32) -> (i32, i32, i32) {
    %c0_i32 = arith.constant 0 : i32
    %c0_i32_0 = arith.constant 0 : i32
    %c0_i32_1 = arith.constant 0 : i32
    %c0_i32_2 = arith.constant 0 : i32
    return %c0_i32, %c0_i32_0, %c0_i32_1 : i32, i32, i32
  }
  func.func @transform_5(%arg0: i32, %arg1: i32) -> (i32, i32, i32) {
    %c0_i32 = arith.constant 0 : i32
    %c0_i32_0 = arith.constant 0 : i32
    %c0_i32_1 = arith.constant 0 : i32
    return %arg0, %c0_i32, %c0_i32_0 : i32, i32, i32
  }
  func.func @transform_6(%arg0: i32, %arg1: i32) -> (i32, i32) {
    %c0_i32 = arith.constant 0 : i32
    %c0_i32_0 = arith.constant 0 : i32
    %c0_i32_1 = arith.constant 0 : i32
    return %c0_i32, %c0_i32_0 : i32, i32
  }
  func.func @transform_7(%arg0: i32, %arg1: i32) -> (i32, i32, i32) {
    %c0_i32 = arith.constant 0 : i32
    %c0_i32_0 = arith.constant 0 : i32
    %c0_i32_1 = arith.constant 0 : i32
    %c0_i32_2 = arith.constant 0 : i32
    return %c0_i32, %c0_i32_0, %c0_i32_1 : i32, i32, i32
  }
  func.func @transform_8(%arg0: i32, %arg1: i32) -> (i32, i32, i32) {
    %c0_i32 = arith.constant 0 : i32
    %c0_i32_0 = arith.constant 0 : i32
    return %arg0, %arg1, %c0_i32 : i32, i32, i32
  }
  func.func @transform_9(%arg0: i32, %arg1: i32) -> (i32, i32, i32) {
    %c0_i32 = arith.constant 0 : i32
    %c0_i32_0 = arith.constant 0 : i32
    return %arg0, %arg1, %c0_i32 : i32, i32, i32
  }
  func.func @transform_10(%arg0: i32, %arg1: i32) -> (i32, i32, i32) {
    %c0_i32 = arith.constant 0 : i32
    %c0_i32_0 = arith.constant 0 : i32
    return %arg0, %arg1, %c0_i32 : i32, i32, i32
  }
}

</mosaic_0001>

<bundles_post_ra>
// kernel: tpu_custom_call.1
= control target key start
LH: loop header
LB: loop body
LE: loop exit
PB: predicated region body
PF: predicated region fallthrough
CT: control target
= control target key end

     0   :  { %s1998_s0 = inlined_call_operand.vmem [shape: bf16[2,16,288], index: 0, kind: input, shape index: {}]   ;;  %s1999_s1 = inlined_call_operand.vmem [shape: f32[2,288,1], index: 1, kind: input, shape index: {}]   ;;  %s2000_s2 = inlined_call_operand.vmem [shape: f32[2,1,32], index: 2, kind: input, shape index: {}]   ;;  %s2001_s3 = inlined_call_operand.vmem [shape: bf16[288,32], index: 3, kind: input, shape index: {}]   ;;  %s2002_s4 = inlined_call_operand.vmem [shape: f32[1,1,32], index: 4, kind: input, shape index: {}]   ;;  %s2003_s5 = inlined_call_operand.vmem [shape: f32[2,32,1], index: 5, kind: input, shape index: {}]   ;;  %s2004_s6 = inlined_call_operand.vmem [shape: bf16[32,3], index: 6, kind: input, shape index: {}]   ;;  %s2005_s7 = inlined_call_operand.vmem [shape: f32[1,1,3], index: 7, kind: input, shape index: {}]   ;;  %s2006_s8 = inlined_call_operand.vmem [shape: f32[2,16,3], index: 8, kind: input, shape index: {}]   ;;  %s2007_s9 = inlined_call_operand.hbm [shape: bf16[2,16,32], index: 9, kind: output, shape index: {0}]   ;;  %s2008_s10 = inlined_call_operand.vmem [shape: f32[2,16,3], index: 10, kind: output, shape index: {1}]  }
   0x1   :  { %2009 = sst [smem:[#allocation5_spill]] %s1998_s0 }
   0x2   :  { %2010 = sst [smem:[#allocation6_spill]] %s1999_s1 }
   0x3   :  { %2011 = sst [smem:[#allocation7_spill]] %s2000_s2 }
   0x4   :  { %2012 = sst [smem:[#allocation8_spill]] %s2001_s3 }
   0x5   :  { %16 = vsyncpa [#allocation3], 0 }
   0x6   :  { %18 = vsyncpa [#allocation3 + $0x1], 0  ;;  %s1704_s13 = smov 0   ;;  %s1706_s14 = smov 0  }
   0x7   :  { %s1708_s15 = smov 0   ;;  %s1710_s16 = smov 0  }
   0x8   :  { %s1712_s17 = smov 0   ;;  %s1714_s18 = smov 0  }
   0x9 LB: > { %s1318_s19 = sadd.s32 4294967295, %s1641_s18   ;;  %s1319_s20 = sadd.s32 4294967294, %s1641_s18   ;;  %s1641_s18 = sphi %s1714_s18, %s24_s18   ;;  %s1637_s17 = sphi %s1712_s17, %s2023_s17   ;;  %s1633_s16 = sphi %s1710_s16, %s2022_s16   ;;  %s1629_s15 = sphi %s1708_s15, %s2021_s15   ;;  %s1625_s14 = sphi %s1706_s14, %s2020_s14   ;;  %s1621_s13 = sphi %s1704_s13, %s2019_s13  }
   0xa   : > { %s36_s21 = sadd.s32 1, %s1637_s17  ;;  %s263_s22 = sadd.s32 1, %s1629_s15 }
   0xb   : > { %p38_p0 = scmp.ge.s32.totalorder %s36_s21, 2  ;;  %p273_p1 = scmp.ne.s32.totalorder %s1629_s15, %s1625_s14 }
   0xc   : > { %p274_p2 = scmp.eq.s32.totalorder %s1318_s19, 1  ;;  %p279_p3 = scmp.ne.s32.totalorder %s1625_s14, %s1621_s13 }
   0xd   : > { %s2025_s21 = smov (%p38_p0, %s36_s21), 0  ;;  %p280_p5 = scmp.eq.s32.totalorder %s1319_s20, 1 }
   0xe   : > { %p1744_p4 = por %p274_p2, %p273_p1  ;;  %s258_s24 = ssub.s32 %s1637_s17, %s2025_s21 }
   0xf   : > { %p1322_p6 = scmp.ge.s32.totalorder %s1641_s18, 1  ;;  %p261_p7 = scmp.eq.s32.totalorder %s258_s24, 0 }
  0x10   : > { %p1751_p8 = por %p280_p5, %p279_p3  ;;  %p387_p9 = scmp.lt.s32.totalorder %s1641_s18, 3 }
  0x11   : > { %s1757_s26 = scalar_select %p261_p7, %s1629_s15, %s263_s22  }
  0x12   : > { %p388_p10 = pnand %p1322_p6, %p387_p9 }
  0x13   : > { %p462_p11 = scmp.lt.s32.totalorder (!%p388_p10), %s1633_s16, 1  ;;  %v1643_v0 = vmov (!%p388_p10), 0   ;;  %s2015_s1 = sld [smem:[#allocation6_spill]] (!%p388_p10)  ;;  %v1644_v40 = vmov (!%p388_p10), 0.0   ;;  %vm1645_vm0 = vmmov (!%p388_p10), 0   ;;  %vm918_vm1 = vcmask (!%p388_p10), 261120  }
  0x14   : > { %391 = sbr.rel (%p388_p10) target bundleno = 681 (0x2a9), region = 56  ;;  %1558 = vset.pattern.permute.xlu1 (!%p388_p10), %v1643_v0  ;;  %1557 = vset.pattern.permute.xlu0 (!%p388_p10), %v1643_v0  ;;  %s2016_s0 = sld [smem:[#allocation5_spill]] (!%p388_p10)  ;;  %vm1020_vm4 = vcmask (!%p388_p10), 257024  }
  0x15   : > { %1479 = vmatprep.subr.bf16.mxu1 (!%p388_p10), %v1644_v40  ;;  %1483 = vmatprep.mubr.msk.bf16.mxu1 (!%p388_p10), %vm1645_vm0, %v1644_v40  ;;  %s2017_s3 = sld [smem:[#allocation8_spill]] (!%p388_p10)  ;;  %s2018_s2 = sld [smem:[#allocation7_spill]] (!%p388_p10) }
  0x1b   : > { %s1761_s27 = scalar_select %p462_p11, %s1633_s16, 1  ;;  %v1440_v43 = vld [vmem:[%s2017_s3 + $0x40] sm:$0xff]   ;;  %v1441_v51 = vld [vmem:[%s2017_s3 + $0x48] sm:$0xff]  }
  0x1c   : > { %v1354_v44 = vld [vmem:[%s2017_s3] sm:$0xff]   ;;  %v1387_v45 = vunpack.c.l.bf16 %v1440_v43  ;;  %v1388_v49 = vunpack.c.h.bf16 %v1440_v43  ;;  %v1391_v59 = vunpack.c.l.bf16 %v1441_v51  ;;  %v1392_v60 = vunpack.c.h.bf16 %v1441_v51  ;;  %v1433_v61 = vld [vmem:[%s2017_s3 + $0x8] sm:$0xff]  }
  0x1d   : > { %s1496_s28 = smul.u32 288, %s1761_s27  ;;  %s1347_s12 = sshll.u32 %s1761_s27, 5  ;;  %v1355_v46 = vunpack.c.l.bf16 %v1354_v44  ;;  %v1356_v50 = vunpack.c.h.bf16 %v1354_v44  ;;  %v1444_v51 = vld [vmem:[%s2017_s3 + $0x60] sm:$0xff]  }
  0x1e   : > { %s1495_s19 = smul.u32 24, %s1761_s27  ;;  %s484_s30 = scalar_lea.vmem %s2003_s5, %s1347_s12 }
  0x1f   : > { %s1767_s11 = scalar_lea.vmem %s2015_s1, %s1496_s28  ;;  %v1031_v38 = vld [vmem:[%s484_s30] sm:$0xff]  ;;  %v1032_v39 = vld [vmem:[%s484_s30 + $0x8] sm:$0xff]  ;;  %v1033_v41 = vld [vmem:[%s484_s30 + $0x10] sm:$0xff]  ;;  %s479_s29 = scalar_lea.vmem %s2018_s2, %s1761_s27 }
  0x20   : > { %v595_v1 = vld [vmem:[%s1767_s11 + $0x80] sm:$0xff]  ;;  %v596_v3 = vld [vmem:[%s1767_s11 + $0x88] sm:$0xff]  ;;  %v597_v5 = vld [vmem:[%s1767_s11 + $0x90] sm:$0xff]  ;;  %s1810_s24 = scalar_lea.vmem %s2016_s0, %s1495_s19  ;;  %s1352_s0 = sshll.u32 %s1633_s16, 7 }
  0x21   : > { %v579_v2 = vld [vmem:[%s1767_s11] sm:$0xff]  ;;  %697 = vperm.xlu0 %1557, %v595_v1   ;;  %v580_v4 = vld [vmem:[%s1767_s11 + $0x8] sm:$0xff]  ;;  %v598_v6 = vld [vmem:[%s1767_s11 + $0x98] sm:$0xff]  ;;  %s1938_s28 = scalar_lea.hbm %s2007_s9, %s1352_s0 }
  0x22   : > { %617 = vperm.xlu1 %1558, %v579_v2   ;;  %v581_v7 = vld [vmem:[%s1767_s11 + $0x10] sm:$0xff]  ;;  %v582_v8 = vld [vmem:[%s1767_s11 + $0x18] sm:$0xff]  ;;  %v599_v9 = vld [vmem:[%s1767_s11 + $0xa0] sm:$0xff] }
  0x23   : > { %v600_v10 = vld [vmem:[%s1767_s11 + $0xa8] sm:$0xff]  ;;  %v583_v11 = vld [vmem:[%s1767_s11 + $0x20] sm:$0xff]  ;;  %v601_v13 = vld [vmem:[%s1767_s11 + $0xb0] sm:$0xff] }
  0x24   : > { %v584_v12 = vld [vmem:[%s1767_s11 + $0x28] sm:$0xff]  ;;  %v602_v14 = vld [vmem:[%s1767_s11 + $0xb8] sm:$0xff]  ;;  %v585_v15 = vld [vmem:[%s1767_s11 + $0x30] sm:$0xff] }
  0x25   : > { %702 = vperm.xlu0 %1557, %v596_v3   ;;  %v586_v16 = vld [vmem:[%s1767_s11 + $0x38] sm:$0xff]  ;;  %v603_v17 = vld [vmem:[%s1767_s11 + $0xc0] sm:$0xff]  ;;  %v604_v18 = vld [vmem:[%s1767_s11 + $0xc8] sm:$0xff] }
  0x26   : > { %622 = vperm.xlu1 %1558, %v580_v4   ;;  %v587_v19 = vld [vmem:[%s1767_s11 + $0x40] sm:$0xff]  ;;  %v588_v20 = vld [vmem:[%s1767_s11 + $0x48] sm:$0xff]  ;;  %v605_v21 = vld [vmem:[%s1767_s11 + $0xd0] sm:$0xff]  ;;  %v1359_v4 = vunpack.c.l.bf16 %v1433_v61 }
  0x27   : > { %v606_v22 = vld [vmem:[%s1767_s11 + $0xd8] sm:$0xff]  ;;  %v589_v23 = vld [vmem:[%s1767_s11 + $0x50] sm:$0xff]  ;;  %v607_v25 = vld [vmem:[%s1767_s11 + $0xe0] sm:$0xff] }
  0x28   : > { %v590_v24 = vld [vmem:[%s1767_s11 + $0x58] sm:$0xff]  ;;  %v608_v26 = vld [vmem:[%s1767_s11 + $0xe8] sm:$0xff]  ;;  %v591_v27 = vld [vmem:[%s1767_s11 + $0x60] sm:$0xff] }
  0x29   : > { %707 = vperm.xlu0 %1557, %v597_v5   ;;  %v592_v28 = vld [vmem:[%s1767_s11 + $0x68] sm:$0xff]  ;;  %v609_v29 = vld [vmem:[%s1767_s11 + $0xf0] sm:$0xff]  ;;  %v610_v30 = vld [vmem:[%s1767_s11 + $0xf8] sm:$0xff]  ;;  %v1360_v5 = vunpack.c.h.bf16 %v1433_v61  ;;  %v1404_v61 = vunpack.c.h.bf16 %v1444_v51 }
  0x2a   : > { %712 = vperm.xlu1 %1558, %v598_v6   ;;  %v593_v31 = vld [vmem:[%s1767_s11 + $0x70] sm:$0xff]  ;;  %v594_v32 = vld [vmem:[%s1767_s11 + $0x78] sm:$0xff]  ;;  %v611_v33 = vld [vmem:[%s1767_s11 + $0x100] sm:$0xff] }
  0x2b   : > { %v612_v34 = vld [vmem:[%s1767_s11 + $0x108] sm:$0xff]  ;;  %v613_v35 = vld [vmem:[%s1767_s11 + $0x110] sm:$0xff]  ;;  %v614_v36 = vld [vmem:[%s1767_s11 + $0x118] sm:$0xff] }
  0x2c   : > { %v1561_v37 = vld [vmem:[%s1810_s24 + $0x4] ss:$12 sps:$4 sm:$0xff]   ;;  %v1034_v42 = vld [vmem:[%s484_s30 + $0x18] sm:$0xff]  ;;  %v1832_v54 = vld [vmem:[%s479_s29] ss:$0 sm:$0xff]  ;;  %s447_s30 = sand.u32 1, %s1625_s14  }
  0x2d   : > { %627 = vperm.xlu0 %1557, %v581_v7   ;;  %954 = vmatprep.mubr.bf16.mxu0 %v1561_v37  ;;  %s1323_s11 = sshll.u32 %s447_s30, 3 }
  0x2e   : > { %632 = vperm.xlu1 %1558, %v582_v8   ;;  %s449_s12 = scalar_lea.vmem [#allocation2], %s1323_s11  ;;  %s1646_s11 = smov [#allocation2]  }
  0x2f   : > { %s1144_s19 = sshll.u32 %s449_s12, 4  ;;  %s1567_s16 = sshll.u32 %s1646_s11, 4  ;;  %s1940_s19 = int_to_ptr.vmem [resolvable:$true] %s1144_s19  ;;  %s1568_s16 = int_to_ptr.vmem [resolvable:$false] %s1567_s16 }
  0x30   : > { %s1563_s29 = scalar_lea.vmem %s1940_s19, 128  ;;  %p1570_p1 = scmp.lt.s32.totalorder %s1940_s19, %s1568_s16 }
  0x31   : > { %717 = vperm.xlu0 %1557, %v599_v9   ;;  %p1564_p12 = scmp.ne.s32.totalorder %s1940_s19, %s1563_s29 }
  0x32   : > { %722 = vperm.xlu1 %1558, %v600_v10   ;;  %v1442_v10 = vld [vmem:[%s2017_s3 + $0x50] sm:$0xff]  }
  0x33   : > { %p1565_p13 = pnand %p1564_p12, %p1744_p4 }
  0x35   : > { %637 = vperm.xlu0 %1557, %v583_v11   ;;  %p1566_p0 = pneg %p1565_p13 }
  0x36   : > { %642 = vperm.xlu1 %1558, %v584_v12  }
  0x39   : > { %727 = vperm.xlu0 %1557, %v601_v13  }
  0x3a   : > { %732 = vperm.xlu1 %1558, %v602_v14  }
  0x3d   : > { %647 = vperm.xlu0 %1557, %v585_v15   ;;  %v1395_v15 = vunpack.c.l.bf16 %v1442_v10 }
  0x3e   : > { %652 = vperm.xlu1 %1558, %v586_v16  }
  0x41   : > { %737 = vperm.xlu0 %1557, %v603_v17  }
  0x42   : > { %742 = vperm.xlu1 %1558, %v604_v18  }
  0x45   : > { %657 = vperm.xlu0 %1557, %v587_v19   ;;  %v1396_v19 = vunpack.c.h.bf16 %v1442_v10 }
  0x46   : > { %662 = vperm.xlu1 %1558, %v588_v20   ;;  %v1434_v20 = vld [vmem:[%s2017_s3 + $0x10] sm:$0xff]  }
  0x49   : > { %747 = vperm.xlu0 %1557, %v605_v21  }
  0x4a   : > { %752 = vperm.xlu1 %1558, %v606_v22  }
  0x4d   : > { %667 = vperm.xlu0 %1557, %v589_v23  }
  0x4e   : > { %672 = vperm.xlu1 %1558, %v590_v24  }
  0x51   : > { %757 = vperm.xlu0 %1557, %v607_v25   ;;  %v1363_v25 = vunpack.c.l.bf16 %v1434_v20 }
  0x52   : > { %762 = vperm.xlu1 %1558, %v608_v26  }
  0x55   : > { %677 = vperm.xlu0 %1557, %v591_v27  }
  0x56   : > { %682 = vperm.xlu1 %1558, %v592_v28  }
  0x59   : > { %767 = vperm.xlu0 %1557, %v609_v29   ;;  %v1364_v29 = vunpack.c.h.bf16 %v1434_v20 }
  0x5a   : > { %772 = vperm.xlu1 %1558, %v610_v30   ;;  %v1443_v30 = vld [vmem:[%s2017_s3 + $0x58] sm:$0xff]  }
  0x5d   : > { %687 = vperm.xlu0 %1557, %v593_v31  }
  0x5e   : > { %692 = vperm.xlu1 %1558, %v594_v32  }
  0x61   : > { %777 = vperm.xlu0 %1557, %v611_v33  }
  0x62   : > { %782 = vperm.xlu1 %1558, %v612_v34  }
  0x65   : > { %787 = vperm.xlu0 %1557, %v613_v35   ;;  %v1399_v35 = vunpack.c.l.bf16 %v1443_v30 }
  0x66   : > { %792 = vperm.xlu1 %1558, %v614_v36  }
  0x69   : > { %1037 = vperm.xlu0 %1557, %v1031_v38  }
  0x6a   : > { %1042 = vperm.xlu1 %1558, %v1032_v39   ;;  %v1400_v39 = vunpack.c.h.bf16 %v1443_v30 }
  0x6d   : > { %1047 = vperm.xlu0 %1557, %v1033_v41   ;;  %v1435_v41 = vld [vmem:[%s2017_s3 + $0x18] sm:$0xff]  }
  0x6e   : > { %1052 = vperm.xlu1 %1558, %v1034_v42  }
  0xa0   : > { %v698_v47 = vpop.permute.xlu0 %697 }
  0xa1   : > { %v618_v48 = vpop.permute.xlu1 %617  ;;  %v811_v52 = vmul.f32 %v1387_v45, %v698_v47 }
  0xa2   : > { %v795_v53 = vmul.f32 %v1355_v46, %v618_v48  ;;  %v1367_v46 = vunpack.c.l.bf16 %v1435_v41 }
  0xa3   : > { %v854_v0 = vmul.f32 %v1832_v54, %v811_v52 }
  0xa4   : > { %v703_v55 = vpop.permute.xlu0 %702  ;;  %v838_v62 = vmul.f32 %v1832_v54, %v795_v53 }
  0xa5   : > { %v623_v56 = vpop.permute.xlu1 %622  ;;  %v812_v57 = vmul.f32 %v1388_v49, %v703_v55 }
  0xa6   : > { %v796_v58 = vmul.f32 %v1356_v50, %v623_v56  ;;  %v1368_v50 = vunpack.c.h.bf16 %v1435_v41 }
  0xa7   : > { %v855_v1 = vmul.f32 %v1832_v54, %v812_v57  ;;  %v1403_v57 = vunpack.c.l.bf16 %v1444_v51 }
  0xa8   : > { %v839_v63 = vmul.f32 %v1832_v54, %v796_v58  ;;  %v708_v2 = vpop.permute.xlu0 %707 }
  0xa9   : > { %v713_v3 = vpop.permute.xlu1 %712  ;;  %v813_v6 = vmul.f32 %v1391_v59, %v708_v2  ;;  %v882_v8 = vpack.c.bf16 %v855_v1, %v854_v0 }
  0xaa   : > { %v814_v7 = vmul.f32 %v1392_v60, %v713_v3  ;;  %v874_v9 = vpack.c.bf16 %v839_v63, %v838_v62  ;;  %v1436_v62 = vld [vmem:[%s2017_s3 + $0x20] sm:$0xff]  }
  0xab   : > { %v856_v11 = vmul.f32 %v1832_v54, %v813_v6  ;;  %1451 = vmatprep.subr.bf16.mxu0 %v882_v8  ;;  %v1371_v3 = vunpack.c.l.bf16 %v1436_v62  ;;  %v1445_v8 = vld [vmem:[%s2017_s3 + $0x68] sm:$0xff]  }
  0xac   : > { %v857_v12 = vmul.f32 %v1832_v54, %v814_v7  ;;  %v628_v13 = vpop.permute.xlu0 %627  ;;  %1452 = vmatpush3.bf16.msra.mxu0 %v874_v9  ;;  %v1372_v7 = vunpack.c.h.bf16 %v1436_v62 }
  0xad   : > { %v633_v14 = vpop.permute.xlu1 %632  ;;  %v797_v16 = vmul.f32 %v1359_v4, %v628_v13  ;;  %v1407_v13 = vunpack.c.l.bf16 %v1445_v8 }
  0xae   : > { %v798_v17 = vmul.f32 %v1360_v5, %v633_v14  ;;  %v883_v18 = vpack.c.bf16 %v857_v12, %v856_v11 }
  0xaf   : > { %v840_v21 = vmul.f32 %v1832_v54, %v797_v16 }
  0xb0   : > { %v841_v22 = vmul.f32 %v1832_v54, %v798_v17  ;;  %1453 = vmatprep.subr.bf16.mxu0 %v883_v18  ;;  %v718_v23 = vpop.permute.xlu0 %717  ;;  %v1408_v17 = vunpack.c.h.bf16 %v1445_v8  ;;  %v1437_v18 = vld [vmem:[%s2017_s3 + $0x28] sm:$0xff]  }
  0xb1   : > { %v723_v24 = vpop.permute.xlu1 %722  ;;  %v815_v26 = vmul.f32 %v1395_v15, %v718_v23  ;;  %v1375_v23 = vunpack.c.l.bf16 %v1437_v18 }
  0xb2   : > { %v816_v27 = vmul.f32 %v1396_v19, %v723_v24  ;;  %v875_v28 = vpack.c.bf16 %v841_v22, %v840_v21 }
  0xb3   : > { %v858_v31 = vmul.f32 %v1832_v54, %v815_v26 }
  0xb4   : > { %v859_v32 = vmul.f32 %v1832_v54, %v816_v27  ;;  %1454 = vmatpush3.bf16.msra.mxu0 %v875_v28  ;;  %v638_v33 = vpop.permute.xlu0 %637  ;;  %v1376_v27 = vunpack.c.h.bf16 %v1437_v18  ;;  %v1446_v28 = vld [vmem:[%s2017_s3 + $0x70] sm:$0xff]  }
  0xb5   : > { %v643_v34 = vpop.permute.xlu1 %642  ;;  %v799_v36 = vmul.f32 %v1363_v25, %v638_v33  ;;  %v1411_v33 = vunpack.c.l.bf16 %v1446_v28 }
  0xb6   : > { %v800_v37 = vmul.f32 %v1364_v29, %v643_v34  ;;  %v884_v38 = vpack.c.bf16 %v859_v32, %v858_v31 }
  0xb7   : > { %v842_v42 = vmul.f32 %v1832_v54, %v799_v36 }
  0xb8   : > { %v843_v43 = vmul.f32 %v1832_v54, %v800_v37  ;;  %1455 = vmatprep.subr.bf16.mxu0 %v884_v38  ;;  %v728_v44 = vpop.permute.xlu0 %727  ;;  %v1412_v37 = vunpack.c.h.bf16 %v1446_v28  ;;  %v1438_v38 = vld [vmem:[%s2017_s3 + $0x30] sm:$0xff]  }
  0xb9   : > { %v733_v45 = vpop.permute.xlu1 %732  ;;  %v817_v47 = vmul.f32 %v1399_v35, %v728_v44  ;;  %v1379_v44 = vunpack.c.l.bf16 %v1438_v38 }
  0xba   : > { %v818_v48 = vmul.f32 %v1400_v39, %v733_v45  ;;  %v876_v49 = vpack.c.bf16 %v843_v43, %v842_v42 }
  0xbb   : > { %v860_v52 = vmul.f32 %v1832_v54, %v817_v47 }
  0xbc   : > { %v861_v53 = vmul.f32 %v1832_v54, %v818_v48  ;;  %1456 = vmatpush3.bf16.msra.mxu0 %v876_v49  ;;  %v648_v55 = vpop.permute.xlu0 %647  ;;  %v1380_v48 = vunpack.c.h.bf16 %v1438_v38  ;;  %v1447_v49 = vld [vmem:[%s2017_s3 + $0x78] sm:$0xff]  }
  0xbd   : > { %v653_v56 = vpop.permute.xlu1 %652  ;;  %v801_v58 = vmul.f32 %v1367_v46, %v648_v55  ;;  %v1415_v55 = vunpack.c.l.bf16 %v1447_v49 }
  0xbe   : > { %v802_v59 = vmul.f32 %v1368_v50, %v653_v56  ;;  %v885_v60 = vpack.c.bf16 %v861_v53, %v860_v52 }
  0xbf   : > { %v844_v63 = vmul.f32 %v1832_v54, %v801_v58 }
  0xc0   : > { %v845_v0 = vmul.f32 %v1832_v54, %v802_v59  ;;  %1457 = vmatprep.subr.bf16.mxu0 %v885_v60  ;;  %v738_v1 = vpop.permute.xlu0 %737  ;;  %v1416_v59 = vunpack.c.h.bf16 %v1447_v49  ;;  %v1439_v60 = vld [vmem:[%s2017_s3 + $0x38] sm:$0xff]  }
  0xc1   : > { %v743_v2 = vpop.permute.xlu1 %742  ;;  %v819_v4 = vmul.f32 %v1403_v57, %v738_v1  ;;  %v1383_v1 = vunpack.c.l.bf16 %v1439_v60 }
  0xc2   : > { %v820_v5 = vmul.f32 %v1404_v61, %v743_v2  ;;  %v877_v6 = vpack.c.bf16 %v845_v0, %v844_v63 }
  0xc3   : > { %v862_v9 = vmul.f32 %v1832_v54, %v819_v4 }
  0xc4   : > { %v863_v10 = vmul.f32 %v1832_v54, %v820_v5  ;;  %1458 = vmatpush3.bf16.msra.mxu0 %v877_v6  ;;  %v658_v11 = vpop.permute.xlu0 %657  ;;  %v1384_v5 = vunpack.c.h.bf16 %v1439_v60  ;;  %v1448_v6 = vld [vmem:[%s2017_s3 + $0x80] sm:$0xff]  }
  0xc5   : > { %v663_v12 = vpop.permute.xlu1 %662  ;;  %v803_v14 = vmul.f32 %v1371_v3, %v658_v11  ;;  %v1419_v11 = vunpack.c.l.bf16 %v1448_v6 }
  0xc6   : > { %v804_v15 = vmul.f32 %v1372_v7, %v663_v12  ;;  %v886_v16 = vpack.c.bf16 %v863_v10, %v862_v9 }
  0xc7   : > { %v846_v19 = vmul.f32 %v1832_v54, %v803_v14 }
  0xc8   : > { %v847_v20 = vmul.f32 %v1832_v54, %v804_v15  ;;  %1459 = vmatprep.subr.bf16.mxu0 %v886_v16  ;;  %v748_v21 = vpop.permute.xlu0 %747  ;;  %v1420_v15 = vunpack.c.h.bf16 %v1448_v6  ;;  %v1449_v16 = vld [vmem:[%s2017_s3 + $0x88] sm:$0xff]  }
  0xc9   : > { %v753_v22 = vpop.permute.xlu1 %752  ;;  %v821_v24 = vmul.f32 %v1407_v13, %v748_v21  ;;  %v1423_v21 = vunpack.c.l.bf16 %v1449_v16 }
  0xca   : > { %v822_v25 = vmul.f32 %v1408_v17, %v753_v22  ;;  %v878_v26 = vpack.c.bf16 %v847_v20, %v846_v19 }
  0xcb   : > { %v864_v29 = vmul.f32 %v1832_v54, %v821_v24 }
  0xcc   : > { %v865_v30 = vmul.f32 %v1832_v54, %v822_v25  ;;  %1460 = vmatpush3.bf16.msra.mxu0 %v878_v26  ;;  %v668_v31 = vpop.permute.xlu0 %667  ;;  %v1424_v25 = vunpack.c.h.bf16 %v1449_v16  ;;  %v1426_v26 = vld [vmem:[%s2004_s6] sm:$0xff]  }
  0xcd   : > { %v673_v32 = vpop.permute.xlu1 %672  ;;  %v805_v34 = vmul.f32 %v1375_v23, %v668_v31 }
  0xce   : > { %v806_v35 = vmul.f32 %v1376_v27, %v673_v32  ;;  %v887_v36 = vpack.c.bf16 %v865_v30, %v864_v29  ;;  %v1559_v27 = vld [vmem:[%s1810_s24] ss:$12 sps:$4 sm:$0xff]   ;;  %v1427_v32 = vunpack.c.l.bf16 %v1426_v26 }
  0xcf   : > { %v848_v39 = vmul.f32 %v1832_v54, %v805_v34 }
  0xd0   : > { %v849_v41 = vmul.f32 %v1832_v54, %v806_v35  ;;  %1461 = vmatprep.subr.bf16.mxu0 %v887_v36  ;;  %v758_v42 = vpop.permute.xlu0 %757  ;;  %v1428_v36 = vunpack.c.h.bf16 %v1426_v26 }
  0xd1   : > { %v763_v43 = vpop.permute.xlu1 %762  ;;  %v823_v45 = vmul.f32 %v1411_v33, %v758_v42 }
  0xd2   : > { %v824_v46 = vmul.f32 %v1412_v37, %v763_v43  ;;  %v879_v47 = vpack.c.bf16 %v849_v41, %v848_v39  ;;  %v1450_v37 = vld [vmem:[%s2004_s6 + $0x8] sm:$0xff]  }
  0xd3   : > { %v866_v50 = vmul.f32 %v1832_v54, %v823_v45  ;;  %v1431_v43 = vunpack.c.l.bf16 %v1450_v37 }
  0xd4   : > { %v867_v51 = vmul.f32 %v1832_v54, %v824_v46  ;;  %1462 = vmatpush3.bf16.msra.mxu0 %v879_v47  ;;  %v678_v52 = vpop.permute.xlu0 %677  ;;  %v1432_v47 = vunpack.c.h.bf16 %v1450_v37 }
  0xd5   : > { %v683_v53 = vpop.permute.xlu1 %682  ;;  %v807_v56 = vmul.f32 %v1379_v44, %v678_v52 }
  0xd6   : > { %v808_v57 = vmul.f32 %v1380_v48, %v683_v53  ;;  %v888_v58 = vpack.c.bf16 %v867_v51, %v866_v50  ;;  %v1562_v48 = vld [vmem:[%s1810_s24 + $0x8] ss:$12 sps:$4 sm:$0xff]   ;;  %s1942_s24 = scalar_lea.sflag [#allocation3], %s447_s30 }
  0xd7   : > { %v850_v61 = vmul.f32 %v1832_v54, %v807_v56 }
  0xd8   : > { %v851_v62 = vmul.f32 %v1832_v54, %v808_v57  ;;  %1463 = vmatprep.subr.bf16.mxu0 %v888_v58  ;;  %v768_v63 = vpop.permute.xlu0 %767 }
  0xd9   : > { %v773_v0 = vpop.permute.xlu1 %772  ;;  %v825_v2 = vmul.f32 %v1415_v55, %v768_v63 }
  0xda   : > { %v826_v3 = vmul.f32 %v1416_v59, %v773_v0  ;;  %v880_v4 = vpack.c.bf16 %v851_v62, %v850_v61  ;;  %v1333_v59 = vld [vmem:[%s2002_s4] ss:$0 sm:$0xff] }
  0xdb   : > { %v868_v7 = vmul.f32 %v1832_v54, %v825_v2 }
  0xdc   : > { %v869_v8 = vmul.f32 %v1832_v54, %v826_v3  ;;  %1464 = vmatpush3.bf16.msra.mxu0 %v880_v4  ;;  %v688_v9 = vpop.permute.xlu0 %687 }
  0xdd   : > { %v693_v10 = vpop.permute.xlu1 %692  ;;  %v809_v12 = vmul.f32 %v1383_v1, %v688_v9 }
  0xde   : > { %v810_v13 = vmul.f32 %v1384_v5, %v693_v10  ;;  %v889_v14 = vpack.c.bf16 %v869_v8, %v868_v7 }
  0xdf   : > { %v852_v17 = vmul.f32 %v1832_v54, %v809_v12 }
  0xe0   : > { %v853_v18 = vmul.f32 %v1832_v54, %v810_v13  ;;  %1465 = vmatprep.subr.bf16.mxu0 %v889_v14  ;;  %v778_v19 = vpop.permute.xlu0 %777 }
  0xe1   : > { %v783_v20 = vpop.permute.xlu1 %782  ;;  %v827_v22 = vmul.f32 %v1419_v11, %v778_v19 }
  0xe2   : > { %v828_v23 = vmul.f32 %v1420_v15, %v783_v20  ;;  %v881_v24 = vpack.c.bf16 %v853_v18, %v852_v17 }
  0xe3   : > { %v870_v28 = vmul.f32 %v1832_v54, %v827_v22 }
  0xe4   : > { %v871_v29 = vmul.f32 %v1832_v54, %v828_v23  ;;  %1466 = vmatpush3.bf16.msra.mxu0 %v881_v24  ;;  %v788_v30 = vpop.permute.xlu0 %787 }
  0xe5   : > { %v793_v31 = vpop.permute.xlu1 %792  ;;  %v829_v33 = vmul.f32 %v1423_v21, %v788_v30 }
  0xe6   : > { %v830_v34 = vmul.f32 %v1424_v25, %v793_v31  ;;  %v890_v35 = vpack.c.bf16 %v871_v29, %v870_v28 }
  0xe7   : > { %955 = vmatmul.mubr.bf16.vlgmr.msra.gmra.mrb[0].mxu0 %v1559_v27  ;;  %v872_v38 = vmul.f32 %v1832_v54, %v829_v33 }
  0xe8   : > { %v873_v39 = vmul.f32 %v1832_v54, %v830_v34  ;;  %1480 = vmatpush3.bf16.msra.mxu1 %v890_v35  ;;  %v1038_v41 = vpop.permute.xlu0 %1037 }
  0xe9   : > { %v1043_v42 = vpop.permute.xlu1 %1042  ;;  %1481 = vmatprep.subr.bf16.mxu1 %v1644_v40  ;;  %v1055_v44 = vmul.f32 %v1427_v32, %v1038_v41 }
  0xea   : > { %v1056_v45 = vmul.f32 %v1428_v36, %v1043_v42  ;;  %v891_v46 = vpack.c.bf16 %v873_v39, %v872_v38 }
  0xec   : > { %1482 = vmatpush3.bf16.msra.mxu1 %v891_v46  ;;  %v1048_v49 = vpop.permute.xlu0 %1047  ;;  %v1059_v51 = vpack.c.bf16 %v1056_v45, %v1055_v44 }
  0xed   : > { %v1053_v50 = vpop.permute.xlu1 %1052  ;;  %1487 = vmatprep.subr.bf16.mxu1 %v1644_v40  ;;  %v1057_v52 = vmul.f32 %v1431_v43, %v1048_v49 }
  0xee   : > { %v1058_v54 = vmul.f32 %v1432_v47, %v1053_v50 }
  0xef   : > { %1484 = vmatmul.mubr.msk.bf16.vlgmr.msra.gmra.mrb[0].mxu1 %vm918_vm1, %v1562_v48 }
  0xf0   : > { %1488 = vmatpush3.bf16.msra.mxu1 %v1059_v51  ;;  %1491 = vmatprep.mubr.msk.bf16.mxu1 %vm1645_vm0, %v1644_v40  ;;  %v1060_v53 = vpack.c.bf16 %v1058_v54, %v1057_v52 }
  0xf1   : > { %1489 = vmatprep.subr.bf16.mxu1 %v1644_v40 }
  0xf4   : > { %1490 = vmatpush3.bf16.msra.mxu1 %v1060_v53 }
 0x1ba   : > { %v1467_v55 = vpop.f32.mrb[0].mxu0 }
 0x1bb   : > { %v1468_v56 = vpop.f32.mrb[1].mxu0 }
 0x1bc   : > { %v1469_v57 = vadd.f32 %v1468_v56, %v1467_v55  ;;  %v1470_v58 = vpop.f32.mrb[2].mxu0 }
 0x1bd   : > { %v1471_v60 = vpop.f32.mrb[3].mxu0 }
 0x1be   : > { %v1472_v61 = vadd.f32 %v1471_v60, %v1470_v58  ;;  %v957_v62 = vadd.f32 %v1469_v57, %v1333_v59 }
 0x1c0   : > { %v960_v2 = vadd.f32 %v1472_v61, %v1333_v59 }
 0x1c2   : > { %v997_v63 = vpop.f32.mrb[0].mxu1 }
 0x1c3   : > { %v998_v0 = vadd.f32 %v997_v63, %v957_v62  ;;  %v1485_v1 = vpop.f32.mrb[1].mxu1 }
 0x1c4   : > { %v1000_v3 = vpop.f32.mrb[2].mxu1 }
 0x1c5   : > { %vm1004_vm2 = vcmp.ge.f32.partialorder %v998_v0, 0.0  ;;  %v1006_v40 = vmul.f32 0.2, %v998_v0  ;;  %v1001_v4 = vadd.f32 %v1000_v3, %v960_v2  ;;  %v1486_v5 = vpop.f32.mrb[3].mxu1 }
 0x1c7   : > { %v1008_v6 = vsel %vm1004_vm2, %v998_v0, %v1006_v40  ;;  %vm1005_vm3 = vcmp.ge.f32.partialorder %v1001_v4, 0.0  ;;  %v1007_v7 = vmul.f32 0.2, %v1001_v4 }
 0x1c8   : > { %v1010_v8 = vmul.f32 1.4142135, %v1008_v6 }
 0x1c9   : > { %v1009_v9 = vsel %vm1005_vm3, %v1001_v4, %v1007_v7 }
 0x1ca   : > { %v1350_v10 = vpack.c.bf16 %v1010_v8, %v1010_v8  ;;  %v1011_v11 = vmul.f32 1.4142135, %v1009_v9 }
 0x1cc   : > { %v1012_v12 = vpack.c.bf16 %v1011_v11, %v1010_v8  ;;  %v1351_v13 = vpack.c.bf16 %v1011_v11, %v1011_v11  ;;  %1021 = vst.msk [vmem:[%s449_s12] sm:$0xf] %vm1020_vm4, %v1350_v10 }
 0x1ce   : > { %1492 = vmatmul.mubr.msk.bf16.vlgmr.msra.gmra.mrb[4].mxu1 %vm918_vm1, %v1012_v12  ;;  %1022 = vst.msk [vmem:[%s449_s12 + $0x4] sm:$0xf] %vm1020_vm4, %v1351_v13  ;;  %s1569_s12 = scalar_lea.vmem %s1568_s16, 256 }
 0x1cf   : > { %p1571_p2 = scmp.lt.s32.totalorder %s1569_s12, %s1563_s29 }
 0x1d1   : > { %p1572_p3 = por %p1571_p2, %p1570_p1 }
 0x1d3   : > { %p1573_p5 = pnand %p1572_p3, %p1566_p0 }
 0x1d5   : > { %1576 = shalt.err (!%p1573_p5)
}
 0x1d6   : > { %s1577_s30 = scalar_lea.hbm %s1938_s28, 128  ;;  %s1581_s22 = scalar_lea.hbm %s2007_s9, 256 }
 0x1d7   : > { %p1578_p6 = scmp.ne.s32.totalorder %s1938_s28, %s1577_s30  ;;  %p1582_p10 = scmp.lt.u32.totalorder %s1938_s28, %s2007_s9 }
 0x1d8   : > { %p1583_p11 = scmp.lt.u32.totalorder %s1581_s22, %s1577_s30  ;;  %p1585_p13 = scmp.lt.u32.totalorder %s1577_s30, %s1938_s28 }
 0x1d9   : > { %p1579_p7 = pnand %p1578_p6, %p1744_p4 }
 0x1da   : > { %p1584_p12 = por %p1583_p11, %p1582_p10 }
 0x1db   : > { %p1580_p9 = pneg %p1579_p7 }
 0x1dc   : > { %p1586_p0 = por %p1585_p13, %p1584_p12 }
 0x1de   : > { %p1587_p1 = pnand %p1586_p0, %p1580_p9 }
 0x1e0   : > { %1590 = shalt.err (!%p1587_p1)
}
 0x1e1   : > { %s1647_s29 = smov 64   ;;  %s1648_s12 = smov 4   ;;  %v1340_v14 = vld [vmem:[%s2005_s7] ss:$0 sm:$0xff]  ;;  %vm1116_vm5 = vcmask 23552  }
 0x1e2   : > { %1497 = dma.vmem_to_hbm [thread:$0]  (%p1744_p4), %s1940_s19, 128, %s1938_s28, %s1942_s24, %s1647_s29, %s1647_s29, %s1648_s12  }
 0x1e3   : > { %s1348_s0 = sshll.u32 %s1761_s27, 4 }
 0x1e4   : > { %s493_s11 = scalar_lea.vmem %s2006_s8, %s1348_s0  ;;  %s504_s3 = scalar_lea.vmem %s2008_s10, %s1348_s0 }
 0x1e5   : > { %v1112_v16 = vld [vmem:[%s493_s11] sm:$0xff]  ;;  %v1113_v20 = vld [vmem:[%s493_s11 + $0x8] sm:$0xff] }
 0x2a1   : > { %v1105_v15 = vpop.f32.mrb[4].mxu1 }
 0x2a2   : > { %v1106_v17 = vadd.f32 %v1340_v14, %v1105_v15  ;;  %v1493_v18 = vpop.f32.mrb[5].mxu1 }
 0x2a3   : > { %v1108_v19 = vpop.f32.mrb[6].mxu1 }
 0x2a4   : > { %v1114_v21 = vadd.f32 %v1112_v16, %v1106_v17  ;;  %v1109_v22 = vadd.f32 %v1340_v14, %v1108_v19  ;;  %v1494_v23 = vpop.f32.mrb[7].mxu1 }
 0x2a6   : > { %1117 = vst.msk [vmem:[%s504_s3] sm:$0xff] %vm1116_vm5, %v1114_v21  ;;  %v1115_v24 = vadd.f32 %v1113_v20, %v1109_v22 }
 0x2a8   : > { %1118 = vst.msk [vmem:[%s504_s3 + $0x8] sm:$0xff] %vm1116_vm5, %v1115_v24 }
 0x2a9 PF: > { %p1503_p4 = scmp.ge.s32.totalorder %s1641_s18, 2  ;;  %s1163_s1 = sand.u32 1, %s1621_s13  }
 0x2aa   : > { %s1164_s23 = scalar_lea.sflag [#allocation3], %s1163_s1 }
 0x2ab   : > { %p1500_p2 = pnand %p1503_p4, %p1751_p8 }
 0x2ad   : > { %1616 = dma.done.wait (!%p1500_p2), %s1164_s23, 128  }
 0x2ae   : > { %1618 = vsyncadd (!%p1500_p2), %s1164_s23, 4294967168  ;;  %s24_s18 = sadd.s32 1, %s1641_s18   ;;  %s2019_s13 = smov %s1625_s14 }
 0x2af   : > { %p21_p3 = scmp.ge.s32.totalorder %s24_s18, 4   ;;  %s2020_s14 = smov %s1629_s15 }
 0x2b0   : > { %s2021_s15 = smov %s1757_s26  ;;  %s2022_s16 = smov %s1637_s17 }
 0x2b1   : > { %s2023_s17 = smov %s2025_s21  ;;  %23 = sbr.rel (!%p21_p3) target bundleno = 9 (0x9), region = 115 }
 0x2b8   :  { %1181 = vsyncpa [#allocation3], 1 }
 0x2b9   :  { %1183 = vsyncpa [#allocation3 + $0x1], 1 }

</bundles_post_ra>
